<compile_context>
chip_gen: v7x
topology: tpu7x:2x2x1
jax: 0.10.0
libtpu: 0.0.40
codegen_flags: <defaults>
</compile_context>

<pallas_src>
import math

import jax
import jax.numpy as jnp
from jax.experimental import pallas as pl
from jax.experimental.pallas import tpu as pltpu


def _cdiv(a: int, b: int) -> int:
    return -(-a // b)


def _make_kernel(rows: int, tile: int, n_per_p: int, acc_rows: int, need_mask: bool):
    """Builds the accumulation kernel for fixed static tiling parameters.

    x_ref / y_ref: (1, 1, tile, 128) channel-0 tiles (native dtypes).
    acc_ref:       (1, 1, acc_rows, 128) float32 output block, resident across
                   the innermost ("arbitrary") grid axis for each (batch,
                   partition) pair.
    """

    def kernel(x_ref, y_ref, acc_ref):
        s = pl.program_id(2)

        @pl.when(s == 0)
        def _init():
            acc_ref[...] = jnp.zeros_like(acc_ref)

        # Hot path: one VPU subtract per vreg, then VPU adds folding the tile
        # into the (acc_rows, 128) accumulator. No per-step cross-lane
        # reduction and no per-step division; the single final reduce happens
        # in the wrapper.
        d = y_ref[0, 0].astype(jnp.float32) - x_ref[0, 0].astype(jnp.float32)

        if need_mask:
            # Tail masking: rows at/after `rows` (including a clamped duplicate
            # block in the last partition) must not contribute. jnp.where does
            # not propagate garbage/NaN from the unselected branch.
            start = (pl.program_id(1) * n_per_p + s) * tile
            valid = rows - start
            row_id = jax.lax.broadcasted_iota(jnp.int32, d.shape, 0)
            d = jnp.where(row_id < valid, d, 0.0)

        if acc_rows == 1:
            # Tiny full-extent tiles only (rows < 8-aligned); one-off XLU reduce.
            acc_ref[0, 0] += jnp.sum(d, axis=0, keepdims=True)
        else:
            # acc_rows == 64 (or 8): acc_rows/8 independent VPU add chains.
            acc_ref[0, 0] += jnp.sum(
                d.reshape(tile // acc_rows, acc_rows, 128), axis=0)

    return kernel


def volumetric_loss(x, y_onehot, *, loss_mask=None, clip_tp=None, batch_dice=False,
                    max_block_bytes=4 * 1024 * 1024):
    """x, y_onehot: (B, C, *spatial) arrays of identical shape (dtypes may differ)."""
    if loss_mask is not None or clip_tp is not None or batch_dice:
        # TODO(synk): loss_mask, clip_tp and the ddp/batch_dice AllGather branch
        # invalidate the channel-0 / denominator==S shortcut and are not implemented.
        raise NotImplementedError(
            "Pallas VolumetricLoss only supports the default ctor args "
            "(batch_dice=False, clip_tp=None, loss_mask=None).")
    assert x.shape == y_onehot.shape, (x.shape, y_onehot.shape)

    B, C = x.shape[0], x.shape[1]
    S = int(math.prod(x.shape[2:]))

    if S % 128 == 0:
        # Zero-copy path: metadata-only reshape; the BlockSpec index_map pins
        # the channel block to 0, so channels 1..C-1 are never read from HBM.
        rows = S // 128
        x4 = jnp.reshape(x, (B, C, rows, 128))
        y4 = jnp.reshape(y_onehot, (B, C, rows, 128))
    else:
        # TODO(synk): a fully zero-copy path for S % 128 != 0 needs element-
        # offset DMA (pl.ANY + make_async_copy); fall back to slicing channel 0
        # (1/C of the bytes) and zero-padding by at most 127 elements per row.
        rows = _cdiv(S, 128)
        pad = rows * 128 - S
        x0 = jnp.pad(jnp.reshape(x, (B, C, S))[:, 0, :], ((0, 0), (0, pad)))
        y0 = jnp.pad(jnp.reshape(y_onehot, (B, C, S))[:, 0, :], ((0, 0), (0, pad)))
        x4 = x0.reshape(B, 1, rows, 128)
        y4 = y0.reshape(B, 1, rows, 128)

    x_item = jnp.dtype(x.dtype).itemsize
    y_item = jnp.dtype(y_onehot.dtype).itemsize
    itemsize = max(x_item, y_item)
    # Largest 64-aligned row tile within the per-input block byte budget
    # (4 MiB f32 -> 8192 rows; narrower dtypes get proportionally taller tiles).
    max_tile = max(64, (max_block_bytes // (128 * itemsize)) // 64 * 64)

    if rows <= max_tile:
        tile, n_s = rows, 1                 # single full-extent spatial block
    else:
        tile, n_s = max_tile, _cdiv(rows, max_tile)

    # Spatial partitions: with 2 "parallel" slots per batch element both v7x
    # TensorCores stay busy even at B == 1 (no effect on single-TC v5e/v6e).
    P = 2 if n_s >= 2 else 1
    n_per_p = _cdiv(n_s, P)
    need_mask = (P * n_per_p * tile) != rows

    if tile % 64 == 0:
        acc_rows = 64                       # 8 independent accumulation chains
    elif tile % 8 == 0:
        acc_rows = 8
    else:
        acc_rows = 1                        # tiny full-extent tiles only

    if P * n_per_p > n_s:
        # Odd block count: the last partition would index one block past the
        # end. Clamp its DMA to the last real block; the kernel's tail mask
        # zeroes that duplicate's contribution.
        def in_map(b, p, s):
            return (b, 0, jnp.minimum(p * n_per_p + s, n_s - 1), 0)
    else:
        def in_map(b, p, s):
            return (b, 0, p * n_per_p + s, 0)

    in_spec = pl.BlockSpec((1, 1, tile, 128), in_map)
    out_spec = pl.BlockSpec((1, 1, acc_rows, 128), lambda b, p, s: (b, p, 0, 0))

    kernel = _make_kernel(rows, tile, n_per_p, acc_rows, need_mask)

    bytes_accessed = B * rows * 128 * (x_item + y_item) + B * P * acc_rows * 128 * 4
    cost = pl.CostEstimate(flops=2 * B * rows * 128, transcendentals=0,
                           bytes_accessed=bytes_accessed)

    partial = pl.pallas_call(
        kernel,
        out_shape=jax.ShapeDtypeStruct((B, P, acc_rows, 128), jnp.float32),
        grid_spec=pltpu.PrefetchScalarGridSpec(
            num_scalar_prefetch=0,
            grid=(B, P, n_per_p),
            in_specs=[in_spec, in_spec],
            out_specs=out_spec,
        ),
        compiler_params=pltpu.CompilerParams(
            # Per-(batch, partition) output blocks -> no shared accumulator, so
            # both leading axes can shard across TensorCores; the innermost
            # spatial axis is the sequential reduction.
            dimension_semantics=("parallel", "parallel", "arbitrary"),
            vmem_limit_bytes=32 * 1024 * 1024),
        cost_estimate=cost,
    )(x4, y4)

    # Final tiny reduction: PotentialLoss[:, 0] = sum(y0 - x0) / S, then square
    # + batch mean (matches the original module's return value).
    potential = jnp.sum(partial, axis=(1, 2, 3)) * (1.0 / float(S))   # (B,)
    return jnp.mean(jnp.square(potential))


def _reference(x, y_onehot):
    """Straight transcription of the original PyTorch formula (all channels)."""
    axes = tuple(range(2, x.ndim))
    xf = x.astype(jnp.float32)
    yf = y_onehot.astype(jnp.float32)
    tp = jnp.sum(xf * yf, axis=axes)
    fp = jnp.sum(xf * (1.0 - yf), axis=axes)
    fn = jnp.sum((1.0 - xf) * yf, axis=axes)
    tn = jnp.sum((1.0 - xf) * (1.0 - yf), axis=axes)
    potential = ((tp + fn) - (tp + fp)) / (tp + fp + fn + tn)
    return jnp.mean(jnp.square(potential[:, 0]))


if __name__ == "__main__":
    # TODO(synk): host-side print() debugging from the original forward is not
    # reproduced in-kernel.
    key = jax.random.PRNGKey(0)
    k1, k2, k3, k4, k5, k6 = jax.random.split(key, 6)

    # Case 1: small 2D input, S % 128 == 0, single full-extent block.
    B, C, H, W = 2, 4, 16, 16
    x = jax.random.uniform(k1, (B, C, H, W), dtype=jnp.float32)
    labels = jax.random.randint(k2, (B, H, W), 0, C)
    y_onehot = jax.nn.one_hot(labels, C, axis=1, dtype=jnp.float32)   # (B,C,H,W)
    loss = jax.block_until_ready(volumetric_loss(x, y_onehot))
    ref = _reference(x, y_onehot)
    assert jnp.allclose(loss, ref, rtol=1e-5, atol=1e-6), (loss, ref)

    # Case 2: awkward 3D spatial size (S % 128 != 0) -> channel-0 slice plus a
    # <=127-element zero pad (contributes exactly 0 to sum(y0 - x0)).
    B2, C2, D2, H2, W2 = 2, 3, 5, 7, 9
    x2 = jax.random.uniform(k3, (B2, C2, D2, H2, W2), dtype=jnp.float32)
    labels2 = jax.random.randint(k4, (B2, D2, H2, W2), 0, C2)
    y2 = jax.nn.one_hot(labels2, C2, axis=1, dtype=jnp.float32)       # (B,C,D,H,W)
    loss2 = jax.block_until_ready(volumetric_loss(x2, y2))
    ref2 = _reference(x2, y2)
    assert jnp.allclose(loss2, ref2, rtol=1e-5, atol=1e-6), (loss2, ref2)

    # Case 3: batch 1, bf16 one-hot target (narrow y-side HBM traffic), small
    # tile budget so the kernel exercises multi-block streaming, the 2-way
    # spatial partitioning, tail masking and the clamped duplicate block
    # (odd block count: 5 blocks across 2 partitions).
    B3, C3 = 1, 2
    spatial3 = (20, 32, 64)                                            # S = 40960
    x3 = jax.random.uniform(k5, (B3, C3) + spatial3, dtype=jnp.float32)
    labels3 = jax.random.randint(k6, (B3,) + spatial3, 0, C3)
    y3 = jax.nn.one_hot(labels3, C3, axis=1, dtype=jnp.bfloat16)
    loss3 = jax.block_until_ready(volumetric_loss(x3, y3, max_block_bytes=32 * 1024))
    ref3 = _reference(x3, y3)
    assert jnp.allclose(loss3, ref3, rtol=1e-5, atol=1e-6), (loss3, ref3)

    print("KERNEL_OK")
</pallas_src>

<mosaic_0001>
module attributes {stable_mosaic.version = 11 : i64} {
  func.func @kernel(%arg0: i32, %arg1: i32, %arg2: i32, %arg3: memref<1x1x2x128xf32, #tpu.memory_space<vmem>>, %arg4: memref<1x1x2x128xf32, #tpu.memory_space<vmem>>, %arg5: memref<1x1x1x128xf32, #tpu.memory_space<vmem>>) attributes {dimension_semantics = [#tpu.dimension_semantics<parallel>, #tpu.dimension_semantics<parallel>, #tpu.dimension_semantics<arbitrary>], iteration_bounds = array<i64: 2, 1, 1>, scalar_prefetch = 0 : i64, scratch_operands = 0 : i64, tpu.core_type = #tpu.core_type<tc>, window_params = [{transform_indices = @transform_0, window_bounds = array<i64: 1, 1, 2, 128>}, {transform_indices = @transform_1, window_bounds = array<i64: 1, 1, 2, 128>}, {transform_indices = @transform_2, window_bounds = array<i64: 1, 1, 1, 128>}]} {
    %c0_i32 = arith.constant 0 : i32
    %0 = arith.cmpi eq, %arg2, %c0_i32 : i32
    %1 = arith.extui %0 : i1 to i32
    %c0_i32_0 = arith.constant 0 : i32
    %2 = arith.cmpi ne, %1, %c0_i32_0 : i32
    scf.if %2 {
      %cst_16 = arith.constant 0.000000e+00 : f32
      %16 = vector.broadcast %cst_16 : f32 to vector<1x1x1x128xf32>
      %c0_17 = arith.constant 0 : index
      %c0_18 = arith.constant 0 : index
      %c0_19 = arith.constant 0 : index
      %c0_20 = arith.constant 0 : index
      %17 = vector.load %arg5[%c0_17, %c0_18, %c0_19, %c0_20] : memref<1x1x1x128xf32, #tpu.memory_space<vmem>>, vector<1x1x1x128xf32>
      tpu.vector_store %arg5[%c0_17, %c0_18, %c0_19, %c0_20], %16 {strides = array<i32>} : memref<1x1x1x128xf32, #tpu.memory_space<vmem>>, vector<1x1x1x128xf32>,
    } else {
    }
    %c0 = arith.constant 0 : index
    %c0_1 = arith.constant 0 : index
    %c0_2 = arith.constant 0 : index
    %c0_3 = arith.constant 0 : index
    %3 = vector.load %arg4[%c0, %c0_1, %c0_2, %c0_3] : memref<1x1x2x128xf32, #tpu.memory_space<vmem>>, vector<1x1x2x128xf32>
    %4 = vector.shape_cast %3 : vector<1x1x2x128xf32> to vector<2x128xf32>
    %c0_4 = arith.constant 0 : index
    %c0_5 = arith.constant 0 : index
    %c0_6 = arith.constant 0 : index
    %c0_7 = arith.constant 0 : index
    %5 = vector.load %arg3[%c0_4, %c0_5, %c0_6, %c0_7] : memref<1x1x2x128xf32, #tpu.memory_space<vmem>>, vector<1x1x2x128xf32>
    %6 = vector.shape_cast %5 : vector<1x1x2x128xf32> to vector<2x128xf32>
    %7 = arith.subf %4, %6 : vector<2x128xf32>
    %c0_8 = arith.constant 0 : index
    %c0_9 = arith.constant 0 : index
    %c0_10 = arith.constant 0 : index
    %c0_11 = arith.constant 0 : index
    %8 = vector.load %arg5[%c0_8, %c0_9, %c0_10, %c0_11] : memref<1x1x1x128xf32, #tpu.memory_space<vmem>>, vector<1x1x1x128xf32>
    %9 = vector.shape_cast %8 : vector<1x1x1x128xf32> to vector<1x128xf32>
    %cst = arith.constant dense<0.000000e+00> : vector<128xf32>
    %10 = vector.multi_reduction <add>, %7, %cst [0] : vector<2x128xf32> to vector<128xf32>
    %11 = vector.shape_cast %10 : vector<128xf32> to vector<1x128xf32>
    %12 = arith.addf %9, %11 : vector<1x128xf32>
    %c0_12 = arith.constant 0 : index
    %c0_13 = arith.constant 0 : index
    %c0_14 = arith.constant 0 : index
    %c0_15 = arith.constant 0 : index
    %13 = vector.load %arg5[%c0_12, %c0_13, %c0_14, %c0_15] : memref<1x1x1x128xf32, #tpu.memory_space<vmem>>, vector<1x1x1x128xf32>
    %14 = vector.shape_cast %13 : vector<1x1x1x128xf32> to vector<1x128xf32>
    %15 = vector.shape_cast %12 : vector<1x128xf32> to vector<1x1x1x128xf32>
    tpu.vector_store %arg5[%c0_12, %c0_13, %c0_14, %c0_15], %15 {strides = array<i32>} : memref<1x1x1x128xf32, #tpu.memory_space<vmem>>, vector<1x1x1x128xf32>,
    return
  }
  func.func @transform_0(%arg0: i32, %arg1: i32, %arg2: i32) -> (i32, i32, i32, i32) {
    %c1_i32 = arith.constant 1 : i32
    %0 = arith.muli %arg1, %c1_i32 : i32
    %1 = arith.addi %0, %arg2 : i32
    %c0_i32 = arith.constant 0 : i32
    %c0_i32_0 = arith.constant 0 : i32
    %c0_i32_1 = arith.constant 0 : i32
    return %arg0, %c0_i32, %1, %c0_i32_0 : i32, i32, i32, i32
  }
  func.func @transform_1(%arg0: i32, %arg1: i32, %arg2: i32) -> (i32, i32, i32, i32) {
    %c1_i32 = arith.constant 1 : i32
    %0 = arith.muli %arg1, %c1_i32 : i32
    %1 = arith.addi %0, %arg2 : i32
    %c0_i32 = arith.constant 0 : i32
    %c0_i32_0 = arith.constant 0 : i32
    %c0_i32_1 = arith.constant 0 : i32
    return %arg0, %c0_i32, %1, %c0_i32_0 : i32, i32, i32, i32
  }
  func.func @transform_2(%arg0: i32, %arg1: i32, %arg2: i32) -> (i32, i32, i32, i32) {
    %c0_i32 = arith.constant 0 : i32
    %c0_i32_0 = arith.constant 0 : i32
    %c0_i32_1 = arith.constant 0 : i32
    return %arg0, %arg1, %c0_i32, %c0_i32_0 : i32, i32, i32, i32
  }
}

</mosaic_0001>

<bundles_post_ra>
// kernel: tpu_custom_call.1
= control target key start
LH: loop header
LB: loop body
LE: loop exit
PB: predicated region body
PF: predicated region fallthrough
CT: control target
= control target key end

     0   :  { %7 = vsyncpa [#allocation3], 0  ;;  %s846_s0 = inlined_call_operand.hbm [shape: f32[2,4,2,128], index: 0, kind: input, shape index: {}]   ;;  %s847_s1 = inlined_call_operand.hbm [shape: f32[2,4,2,128], index: 1, kind: input, shape index: {}]   ;;  %s848_s2 = inlined_call_operand.hbm [shape: f32[2,1,1,128], index: 2, kind: output, shape index: {}]  }
   0x1   :  { %9 = vsyncpa [#allocation3 + $0x1], 0 }
   0x2   :  { %10 = vsyncpa [#allocation6], 0 }
   0x3   :  { %12 = vsyncpa [#allocation6 + $0x1], 0 }
   0x4   :  { %13 = vsyncpa [#allocation4], 0 }
   0x5   :  { %15 = vsyncpa [#allocation4 + $0x1], 0  ;;  %s625_s9 = smov 0   ;;  %s627_s10 = smov 0  }
   0x6   :  { %s629_s11 = smov 0   ;;  %s631_s12 = smov 0  }
   0x7   :  { %s633_s13 = smov 0   ;;  %s635_s14 = smov 0  }
   0x8 LB: > { %s372_s15 = sadd.s32 4294967295, %s604_s14   ;;  %s373_s16 = sadd.s32 4294967294, %s604_s14   ;;  %s604_s14 = sphi %s635_s14, %s21_s14   ;;  %s600_s13 = sphi %s633_s13, %s868_s13   ;;  %s596_s12 = sphi %s631_s12, %s867_s12   ;;  %s592_s11 = sphi %s629_s11, %s866_s11   ;;  %s588_s10 = sphi %s627_s10, %s865_s10   ;;  %s584_s9 = sphi %s625_s9, %s864_s9  }
   0x9   : > { %s40_s17 = sadd.s32 1, %s600_s13  ;;  %s51_s18 = sadd.s32 1, %s592_s11 }
   0xa   : > { %p42_p0 = scmp.ge.s32.totalorder %s40_s17, 2  ;;  %p58_p1 = scmp.ne.s32.totalorder %s592_s11, %s588_s10 }
   0xb   : > { %p59_p2 = scmp.eq.s32.totalorder %s604_s14, 0  ;;  %p64_p3 = scmp.ne.s32.totalorder %s588_s10, %s584_s9 }
   0xc   : > { %s870_s17 = smov (%p42_p0, %s40_s17), 0  ;;  %p65_p5 = scmp.eq.s32.totalorder %s372_s15, 0 }
   0xd   : > { %p666_p4 = por %p59_p2, %p58_p1  ;;  %s46_s20 = ssub.s32 %s600_s13, %s870_s17 }
   0xe   : > { %p120_p6 = scmp.eq.s32.totalorder %s372_s15, 1  ;;  %p49_p7 = scmp.eq.s32.totalorder %s46_s20, 0 }
   0xf   : > { %p672_p8 = por %p65_p5, %p64_p3  ;;  %p126_p10 = scmp.eq.s32.totalorder %s373_s16, 1 }
  0x10   : > { %p676_p9 = por %p120_p6, %p58_p1  ;;  %p407_p13 = scmp.lt.s32.totalorder %s604_s14, 2 }
  0x11   : > { %s852_s21 = scalar_select %p672_p8, 1, 0 }
  0x12   : > { %s853_s22 = scalar_select %p676_p9, 1, 0 }
  0x13   : > { %s681_s23 = scalar_select %p49_p7, %s592_s11, %s51_s18  }
  0x14   : > { %p683_p11 = por %p126_p10, %p64_p3  ;;  %s690_s25 = sand.u32 1, %s592_s11  }
  0x15   : > { %s376_s26 = sshll.u32 %s690_s25, 1  ;;  %s388_s27 = sshll.u32 %s600_s13, 7 }
  0x16   : > { %s854_s24 = scalar_select %p683_p11, 1, 0 }
  0x17   : > { %s699_s30 = scalar_lea.hbm %s846_s0, %s388_s27  ;;  %s150_s3 = scalar_lea.vmem [#allocation2], %s376_s26 }
  0x18   : > { %s160_s4 = sshll.u32 %s150_s3, 4  ;;  %p707_p0 = pnand %p407_p13, %p666_p4  ;;  %s703_s4 = int_to_ptr.vmem [resolvable:$true] %s160_s4 }
  0x19   : > { %s147_s6 = scalar_lea.sflag [#allocation3], %s690_s25  ;;  %s458_s7 = scalar_lea.hbm %s699_s30, 32 }
  0x1a   : > { %p459_p3 = scmp.ne.s32.totalorder %s699_s30, %s458_s7  ;;  %p460_p5 = pneg %p707_p0 }
  0x1b   : > { %s463_s16 = scalar_lea.hbm %s846_s0, 256  ;;  %p464_p4 = scmp.lt.u32.totalorder %s699_s30, %s846_s0 }
  0x1c   : > { %p461_p6 = pnand %p460_p5, %p459_p3  ;;  %p465_p10 = scmp.lt.u32.totalorder %s463_s16, %s458_s7 }
  0x1d   : > { %p467_p12 = scmp.lt.u32.totalorder %s458_s7, %s699_s30 }
  0x1e   : > { %p462_p7 = pneg %p461_p6  ;;  %p466_p13 = por %p465_p10, %p464_p4 }
  0x20   : > { %p468_p1 = por %p467_p12, %p466_p13 }
  0x22   : > { %p469_p2 = pnand %p468_p1, %p462_p7 }
  0x24   : > { %472 = shalt.err (!%p469_p2)
}
  0x25   : > { %s473_s20 = scalar_lea.vmem %s703_s4, 32  ;;  %s606_s28 = smov [#allocation2]  }
  0x26   : > { %p474_p3 = scmp.ne.s32.totalorder %s703_s4, %s473_s20  ;;  %s478_s29 = sshll.u32 %s606_s28, 4  ;;  %s479_s29 = int_to_ptr.vmem [resolvable:$false] %s478_s29 }
  0x27   : > { %s480_s3 = scalar_lea.vmem %s479_s29, 64  ;;  %p481_p9 = scmp.lt.s32.totalorder %s703_s4, %s479_s29 }
  0x28   : > { %p476_p6 = pnand %p474_p3, %p460_p5  ;;  %p482_p4 = scmp.lt.s32.totalorder %s480_s3, %s473_s20 }
  0x2a   : > { %p477_p11 = pneg %p476_p6  ;;  %p483_p10 = por %p482_p4, %p481_p9 }
  0x2c   : > { %p484_p12 = pnand %p483_p10, %p477_p11 }
  0x2e   : > { %487 = shalt.err (!%p484_p12)
}
  0x2f   : > { %399 = dma.hbm_to_vmem [thread:$0]  (!%p707_p0), %s699_s30, 32, %s703_s4, %s147_s6  }
  0x30   : > { %p856_p1 = scmp.lt.s32.totalorder %s604_s14, 3  ;;  %p857_p2 = scmp.ge.s32.totalorder %s604_s14, 1 }
  0x31   : > { %s752_s16 = scalar_lea.hbm %s847_s1, %s388_s27  ;;  %s171_s18 = scalar_lea.vmem [#allocation5], %s376_s26 }
  0x32   : > { %p743_p7 = pnand %p857_p2, %p856_p1  ;;  %s181_s19 = sshll.u32 %s171_s18, 4  ;;  %s182_s19 = int_to_ptr.vmem [resolvable:$true] %s181_s19 }
  0x33   : > { %s168_s30 = scalar_lea.sflag [#allocation6], %s690_s25  ;;  %s488_s4 = scalar_lea.hbm %s752_s16, 32 }
  0x34   : > { %s858_s7 = scalar_select %p743_p7, 1, 0 }
  0x35   : > { %p489_p9 = scmp.ne.s32.totalorder %s752_s16, %s488_s4  ;;  %s493_s27 = scalar_lea.hbm %s847_s1, 256 }
  0x36   : > { %p494_p3 = scmp.lt.u32.totalorder %s752_s16, %s847_s1  ;;  %p495_p6 = scmp.lt.u32.totalorder %s493_s27, %s488_s4 }
  0x37   : > { %p491_p11 = pnand %p489_p9, %p460_p5  ;;  %p497_p10 = scmp.lt.u32.totalorder %s488_s4, %s752_s16 }
  0x38   : > { %p496_p4 = por %p495_p6, %p494_p3 }
  0x39   : > { %p492_p13 = pneg %p491_p11 }
  0x3a   : > { %p498_p12 = por %p497_p10, %p496_p4 }
  0x3c   : > { %p499_p1 = pnand %p498_p12, %p492_p13 }
  0x3e   : > { %502 = shalt.err (!%p499_p1)
}
  0x3f   : > { %s503_s25 = scalar_lea.vmem %s182_s19, 32  ;;  %s607_s26 = smov [#allocation5]  }
  0x40   : > { %p504_p2 = scmp.ne.s32.totalorder %s182_s19, %s503_s25  ;;  %s508_s3 = sshll.u32 %s607_s26, 4  ;;  %s509_s3 = int_to_ptr.vmem [resolvable:$false] %s508_s3 }
  0x41   : > { %s510_s8 = scalar_lea.vmem %s509_s3, 64  ;;  %p511_p8 = scmp.lt.s32.totalorder %s182_s19, %s509_s3 }
  0x42   : > { %p506_p9 = pnand %p504_p2, %p460_p5  ;;  %p512_p7 = scmp.lt.s32.totalorder %s510_s8, %s503_s25 }
  0x44   : > { %p507_p11 = pneg %p506_p9  ;;  %p513_p3 = por %p512_p7, %p511_p8 }
  0x46   : > { %p514_p6 = pnand %p513_p3, %p507_p11 }
  0x48   : > { %517 = shalt.err (!%p514_p6)
}
  0x49   : > { %402 = dma.hbm_to_vmem [thread:$0]  (!%p707_p0), %s752_s16, 32, %s182_s19, %s168_s30  }
  0x4a   : > { %p859_p13 = scmp.ne.s32.totalorder %s858_s7, 0 }
  0x4b   : > { %s779_s15 = sand.u32 (!%p859_p13), 1, %s588_s10   ;;  %p860_p5 = scmp.ne.s32.totalorder (!%p859_p13), %s852_s21, 0 }
  0x4c   : > { %190 = sbr.rel (%p859_p13) target bundleno = 119 (0x77), region = 28  ;;  %s383_s18 = sshll.u32 (!%p859_p13), %s779_s15, 1 }
  0x4d   : > { %s193_s4 = scalar_lea.sflag (!%p859_p13), [#allocation3], %s779_s15  ;;  %s196_s6 = scalar_lea.vmem (!%p859_p13), [#allocation2], %s383_s18 }
  0x53   : > { %571 = dma.done.wait (%p860_p5), %s193_s4, 32  }
  0x54   : > { %573 = vsyncadd (%p860_p5), %s193_s4, 4294967264  ;;  %s202_s5 = scalar_lea.sflag [#allocation6], %s779_s15  ;;  %s205_s16 = scalar_lea.vmem [#allocation5], %s383_s18 }
  0x55   : > { %575 = dma.done.wait (%p860_p5), %s202_s5, 32  }
  0x56   : > { %577 = vsyncadd (%p860_p5), %s202_s5, 4294967264  ;;  %s229_s7 = scalar_lea.vmem [#allocation7], %s779_s15  ;;  %v608_v0 = vmov 0.0   ;;  %v237_v1 = vld [vmem:[%s205_s16] sm:$0x3]  ;;  %vm241_vm0 = vcmask 1041408  }
  0x57   : > { %236 = vst [vmem:[%s229_s7] sm:$0x1] %v608_v0  ;;  %v238_v2 = vld [vmem:[%s196_s6] sm:$0x3]  ;;  %s385_s21 = sshll.u32 %s596_s12, 4  ;;  %s265_s19 = sshll.u32 %s229_s7, 4  ;;  %s799_s19 = int_to_ptr.vmem [resolvable:$true] %s265_s19 }
  0x58   : > { %v239_v3 = vsub.f32 %v237_v1, %v238_v2  ;;  %s797_s27 = scalar_lea.hbm %s848_s2, %s385_s21  ;;  %s252_s28 = scalar_lea.sflag [#allocation4], %s779_s15 }
  0x59   : > { %s518_s29 = scalar_lea.vmem %s799_s19, 16  ;;  %p861_p0 = scmp.ne.s32.totalorder %s853_s22, 0 }
  0x5a   : > { %v242_v4 = vsel %vm241_vm0, %v239_v3, 0.0  ;;  %p519_p8 = scmp.ne.s32.totalorder %s799_s19, %s518_s29  ;;  %s609_s12 = smov [#allocation7]  }
  0x5b   : > { %v243_v5 = vrot.slane %v242_v4, 4  ;;  %s522_s25 = sshll.u32 %s609_s12, 4  ;;  %s523_s25 = int_to_ptr.vmem [resolvable:$false] %s522_s25 }
  0x5c   : > { %p520_p7 = pnand %p519_p8, %p861_p0  ;;  %s524_s26 = scalar_lea.vmem %s523_s25, 32 }
  0x5d   : > { %v244_v6 = vadd.f32 %v243_v5, %v242_v4  ;;  %p525_p10 = scmp.lt.s32.totalorder %s799_s19, %s523_s25  ;;  %p526_p12 = scmp.lt.s32.totalorder %s524_s26, %s518_s29 }
  0x5e   : > { %v240_v10 = vld [vmem:[%s229_s7] sm:$0x1]  ;;  %p521_p4 = pneg %p520_p7 }
  0x5f   : > { %v245_v7 = vrot.slane %v244_v6, 2  ;;  %p527_p1 = por %p526_p12, %p525_p10 }
  0x61   : > { %v246_v8 = vadd.f32 %v245_v7, %v244_v6  ;;  %p528_p2 = pnand %p527_p1, %p521_p4 }
  0x63   : > { %v247_v9 = vrot.slane %v246_v8, 1 }
  0x65   : > { %v248_v11 = vadd.f32 %v247_v9, %v246_v8 }
  0x67   : > { %v249_v12 = vadd.f32 %v248_v11, %v240_v10 }
  0x69   : > { %250 = vst [vmem:[%s229_s7] sm:$0x1] %v249_v12 }
  0x6a   : > { %531 = shalt.err (!%p528_p2)
}
  0x6b   : > { %s532_s3 = scalar_lea.hbm %s797_s27, 16  ;;  %s536_s18 = scalar_lea.hbm %s848_s2, 32 }
  0x6c   : > { %p533_p9 = scmp.ne.s32.totalorder %s797_s27, %s532_s3  ;;  %p537_p6 = scmp.lt.u32.totalorder %s797_s27, %s848_s2 }
  0x6d   : > { %p538_p13 = scmp.lt.u32.totalorder %s536_s18, %s532_s3  ;;  %p540_p8 = scmp.lt.u32.totalorder %s532_s3, %s797_s27 }
  0x6e   : > { %p534_p11 = pnand %p533_p9, %p861_p0 }
  0x6f   : > { %p539_p5 = por %p538_p13, %p537_p6 }
  0x70   : > { %p535_p3 = pneg %p534_p11 }
  0x71   : > { %p541_p7 = por %p540_p8, %p539_p5 }
  0x73   : > { %p542_p4 = pnand %p541_p7, %p535_p3 }
  0x75   : > { %545 = shalt.err (!%p542_p4)
}
  0x76   : > { %394 = dma.vmem_to_hbm [thread:$0]  (%p861_p0), %s799_s19, 16, %s797_s27, %s252_s28  }
  0x77 PF: > { %s277_s5 = sand.u32 1, %s584_s9   ;;  %p862_p10 = scmp.ne.s32.totalorder %s854_s24, 0 }
  0x78   : > { %p863_p12 = scmp.ge.s32.totalorder %s604_s14, 2  ;;  %s278_s16 = scalar_lea.sflag [#allocation4], %s277_s5 }
  0x7a   : > { %p404_p1 = pnand %p863_p12, %p862_p10 }
  0x7c   : > { %579 = dma.done.wait (!%p404_p1), %s278_s16, 16  }
  0x7d   : > { %581 = vsyncadd (!%p404_p1), %s278_s16, 4294967280  ;;  %s21_s14 = sadd.s32 1, %s604_s14   ;;  %s864_s9 = smov %s588_s10 }
  0x7e   : > { %p18_p2 = scmp.ge.s32.totalorder %s21_s14, 4   ;;  %s865_s10 = smov %s592_s11 }
  0x7f   : > { %s866_s11 = smov %s681_s23  ;;  %s867_s12 = smov %s600_s13 }
  0x80   : > { %s868_s13 = smov %s870_s17  ;;  %20 = sbr.rel (!%p18_p2) target bundleno = 8 (0x8), region = 90 }
  0x87   :  { %282 = vsyncpa [#allocation3], 1 }
  0x88   :  { %284 = vsyncpa [#allocation3 + $0x1], 1 }
  0x89   :  { %285 = vsyncpa [#allocation6], 1 }
  0x8a   :  { %287 = vsyncpa [#allocation6 + $0x1], 1 }
  0x8b   :  { %288 = vsyncpa [#allocation4], 1 }
  0x8c   :  { %290 = vsyncpa [#allocation4 + $0x1], 1 }

</bundles_post_ra>
